<compile_context>
chip_gen: v6e
topology: v6e:2x2x1
jax: 0.10.0
libtpu: 0.0.40
codegen_flags: <defaults>
</compile_context>

<pallas_src>
import jax
import jax.numpy as jnp
from jax.experimental import pallas as pl
from jax.experimental.pallas import tpu as pltpu


# ----------------------------- Pallas kernels ------------------------------


def _gcn_layer1_kernel(a_ref, x_ref, w1_ref, h1_ref, acc_ref):
    """H1[i] = relu((sum_k A[i,k] @ X[k]) @ W1), accumulated over the k grid axis."""
    @pl.when(pl.program_id(1) == 0)
    def _():
        acc_ref[...] = jnp.zeros_like(acc_ref)

    acc_ref[...] += jnp.dot(
        a_ref[...], x_ref[...], preferred_element_type=jnp.float32
    )

    @pl.when(pl.program_id(1) == pl.num_programs(1) - 1)
    def _():
        ax_bf = acc_ref[...].astype(jnp.bfloat16)
        h1 = jnp.dot(ax_bf, w1_ref[...], preferred_element_type=jnp.float32)
        h1_ref[...] = jnp.maximum(h1, 0.0).astype(h1_ref.dtype)


def _gcn_pool_layer2_kernel(pa_ref, h1_ref, w2_ref, o_ref, acc_ref):
    """out = (sum_k PA[:, k] @ H1[k]) @ W2, accumulated over the k grid axis."""
    @pl.when(pl.program_id(0) == 0)
    def _():
        acc_ref[...] = jnp.zeros_like(acc_ref)

    acc_ref[...] += jnp.dot(
        pa_ref[...], h1_ref[...], preferred_element_type=jnp.float32
    )

    @pl.when(pl.program_id(0) == pl.num_programs(0) - 1)
    def _():
        o_ref[...] = jnp.dot(
            acc_ref[...].astype(jnp.bfloat16),
            w2_ref[...],
            preferred_element_type=jnp.float32,
        )


# ------------------------------ Host wrapper -------------------------------


def _round_up(v, m):
    return ((v + m - 1) // m) * m


def _pick_tile(n_pad, target=512):
    t = target
    while t > 128 and n_pad % t != 0:
        t //= 2
    return t


def _pad2(a, rows, cols):
    return jnp.pad(a, ((0, rows - a.shape[0]), (0, cols - a.shape[1])))


def gcn_forward_pallas(a_hat, x, w1, w2, pool):
    n = a_hat.shape[0]
    g = pool.shape[0]
    f = x.shape[1]
    h = w1.shape[1]
    c = w2.shape[1]

    # Fold pooling + second aggregation into one small (G, N) matrix.
    pa = pool @ a_hat

    n_pad = _round_up(n, 128)
    tile = _pick_tile(n_pad)            # 512 when possible, 128 at tiny sizes
    tm = tk = tile
    f_pad = _round_up(f, 128)
    h_pad = _round_up(h, 128)
    c_pad = _round_up(c, 128)
    g_pad = _round_up(g, 16)            # bf16 sublane-friendly

    # bf16 operands, f32 accumulation inside the kernels.
    a_p = _pad2(a_hat, n_pad, n_pad).astype(jnp.bfloat16)
    x_p = _pad2(x, n_pad, f_pad).astype(jnp.bfloat16)
    w1_p = _pad2(w1, f_pad, h_pad).astype(jnp.bfloat16)
    w2_p = _pad2(w2, h_pad, c_pad).astype(jnp.bfloat16)
    pa_p = _pad2(pa, g_pad, n_pad).astype(jnp.bfloat16)

    mblocks = n_pad // tm
    kblocks = n_pad // tk

    # Pass 1: H1 = relu((A_hat @ X) @ W1), streamed tile-by-tile over A_hat.
    h1 = pl.pallas_call(
        _gcn_layer1_kernel,
        out_shape=jax.ShapeDtypeStruct((n_pad, h_pad), jnp.bfloat16),
        grid_spec=pltpu.PrefetchScalarGridSpec(
            num_scalar_prefetch=0,
            grid=(mblocks, kblocks),
            in_specs=[
                pl.BlockSpec((tm, tk), lambda i, k: (i, k)),
                pl.BlockSpec((tk, f_pad), lambda i, k: (k, 0)),
                pl.BlockSpec((f_pad, h_pad), lambda i, k: (0, 0)),
            ],
            out_specs=pl.BlockSpec((tm, h_pad), lambda i, k: (i, 0)),
            scratch_shapes=[pltpu.VMEM((tm, f_pad), jnp.float32)],
        ),
        compiler_params=pltpu.CompilerParams(
            dimension_semantics=("parallel", "arbitrary")
        ),
    )(a_p, x_p, w1_p)

    # Pass 2: out = ((pool @ A_hat) @ H1) @ W2.
    out_pad = pl.pallas_call(
        _gcn_pool_layer2_kernel,
        out_shape=jax.ShapeDtypeStruct((g_pad, c_pad), jnp.float32),
        grid_spec=pltpu.PrefetchScalarGridSpec(
            num_scalar_prefetch=0,
            grid=(kblocks,),
            in_specs=[
                pl.BlockSpec((g_pad, tk), lambda k: (0, k)),
                pl.BlockSpec((tk, h_pad), lambda k: (k, 0)),
                pl.BlockSpec((h_pad, c_pad), lambda k: (0, 0)),
            ],
            out_specs=pl.BlockSpec((g_pad, c_pad), lambda k: (0, 0)),
            scratch_shapes=[pltpu.VMEM((g_pad, h_pad), jnp.float32)],
        ),
        compiler_params=pltpu.CompilerParams(
            dimension_semantics=("arbitrary",)
        ),
    )(pa_p, h1, w2_p)

    return out_pad[:g, :c]


# ------------------------------ Plain-JAX glue ------------------------------


def build_norm_adj(edge_index, num_nodes):
    """Dense GCN-normalized adjacency: D^-1/2 (A + I) D^-1/2 (PyG convention)."""
    src = edge_index[0]
    dst = edge_index[1]
    a = jnp.zeros((num_nodes, num_nodes), jnp.float32)
    a = a.at[dst, src].set(1.0)
    a = a + jnp.eye(num_nodes, dtype=jnp.float32)  # add_self_loops=True
    deg = a.sum(axis=1)
    dinv = jnp.where(deg > 0, 1.0 / jnp.sqrt(deg), 0.0)
    return dinv[:, None] * a * dinv[None, :]


def build_mean_pool(batch, num_graphs):
    """Dense pooling matrix P (G, N): P[g, n] = 1/|graph g| if batch[n] == g."""
    onehot = (batch[None, :] == jnp.arange(num_graphs)[:, None]).astype(jnp.float32)
    counts = jnp.maximum(onehot.sum(axis=1, keepdims=True), 1.0)
    return onehot / counts


def glorot(key, shape):
    fan_in, fan_out = shape
    limit = jnp.sqrt(6.0 / (fan_in + fan_out))
    return jax.random.uniform(key, shape, jnp.float32, -limit, limit)


# ----------------------------------- Main -----------------------------------


if __name__ == "__main__":
    # Small deterministic problem: 16 nodes, 2 graphs, nfeat=8, hidden=32, nclass=4.
    nfeat, hidden_channels, nclass = 8, 32, 4
    num_nodes, num_graphs = 16, 2

    key = jax.random.PRNGKey(0)
    k_x, k_w1, k_w2 = jax.random.split(key, 3)

    x = jax.random.normal(k_x, (num_nodes, nfeat), jnp.float32)

    # Undirected ring within each graph of 8 nodes (edges in both directions).
    src_list, dst_list = [], []
    for gidx in range(num_graphs):
        base = gidx * 8
        for i in range(8):
            a_n, b_n = base + i, base + (i + 1) % 8
            src_list += [a_n, b_n]
            dst_list += [b_n, a_n]
    edge_index = jnp.array([src_list, dst_list], dtype=jnp.int32)  # (2, 32)
    batch = jnp.repeat(jnp.arange(num_graphs, dtype=jnp.int32), 8)  # (16,)

    # GCNConv weights (bias=False), stored (in, out) so x @ W.
    w1 = glorot(k_w1, (nfeat, hidden_channels))
    w2 = glorot(k_w2, (hidden_channels, nclass))

    a_hat = build_norm_adj(edge_index, num_nodes)
    pool = build_mean_pool(batch, num_graphs)

    out = gcn_forward_pallas(a_hat, x, w1, w2, pool)
    jax.block_until_ready(out)
    assert out.shape == (num_graphs, nclass)

    # bf16-faithful reference (same casts / reassociation as the kernels).
    f32 = jnp.float32
    bf = lambda t: t.astype(jnp.bfloat16).astype(f32)
    a_b, x_b, w1_b, w2_b = bf(a_hat), bf(x), bf(w1), bf(w2)
    pa_b = bf(pool @ a_hat)
    ax = a_b @ x_b
    h1_ref = jnp.maximum(bf(ax) @ w1_b, 0.0)
    acc_ref = pa_b @ bf(h1_ref)
    ref_bf16 = bf(acc_ref) @ w2_b
    assert jnp.allclose(out, ref_bf16, atol=1e-3, rtol=1e-3)

    # Loose check against the pure-f32 original formulation.
    ref_f32 = pool @ (a_hat @ (jnp.maximum(a_hat @ (x @ w1), 0.0) @ w2))
    assert jnp.allclose(out, ref_f32, atol=5e-2, rtol=5e-2)

    print("KERNEL_OK")
</pallas_src>

<mosaic_0001>
module attributes {stable_mosaic.version = 11 : i64} {
  func.func @_gcn_layer1_kernel(%arg0: i32, %arg1: i32, %arg2: memref<128x128xbf16, #tpu.memory_space<vmem>>, %arg3: memref<128x128xbf16, #tpu.memory_space<vmem>>, %arg4: memref<128x128xbf16, #tpu.memory_space<vmem>>, %arg5: memref<128x128xbf16, #tpu.memory_space<vmem>>, %arg6: memref<128x128xf32, #tpu.memory_space<vmem>>) attributes {dimension_semantics = [#tpu.dimension_semantics<parallel>, #tpu.dimension_semantics<arbitrary>], iteration_bounds = array<i64: 1, 1>, scalar_prefetch = 0 : i64, scratch_operands = 1 : i64, tpu.core_type = #tpu.core_type<tc>, window_params = [{transform_indices = @transform_0, window_bounds = array<i64: 128, 128>}, {transform_indices = @transform_1, window_bounds = array<i64: 128, 128>}, {pipeline_mode = #tpu.pipeline_mode<synchronous>, transform_indices = @transform_2, window_bounds = array<i64: 128, 128>}, {transform_indices = @transform_3, window_bounds = array<i64: 128, 128>}]} {
    %c0_i32 = arith.constant 0 : i32
    %0 = arith.cmpi eq, %arg1, %c0_i32 : i32
    %1 = arith.extui %0 : i1 to i32
    %c0_i32_0 = arith.constant 0 : i32
    %2 = arith.cmpi ne, %1, %c0_i32_0 : i32
    scf.if %2 {
      %cst_10 = arith.constant 0.000000e+00 : f32
      %12 = vector.broadcast %cst_10 : f32 to vector<128x128xf32>
      %c0_11 = arith.constant 0 : index
      %c0_12 = arith.constant 0 : index
      %13 = vector.load %arg6[%c0_11, %c0_12] : memref<128x128xf32, #tpu.memory_space<vmem>>, vector<128x128xf32>
      tpu.vector_store %arg6[%c0_11, %c0_12], %12 {strides = array<i32>} : memref<128x128xf32, #tpu.memory_space<vmem>>, vector<128x128xf32>,
    } else {
    }
    %c0 = arith.constant 0 : index
    %c0_1 = arith.constant 0 : index
    %3 = vector.load %arg6[%c0, %c0_1] : memref<128x128xf32, #tpu.memory_space<vmem>>, vector<128x128xf32>
    %c0_2 = arith.constant 0 : index
    %c0_3 = arith.constant 0 : index
    %4 = vector.load %arg2[%c0_2, %c0_3] : memref<128x128xbf16, #tpu.memory_space<vmem>>, vector<128x128xbf16>
    %c0_4 = arith.constant 0 : index
    %c0_5 = arith.constant 0 : index
    %5 = vector.load %arg3[%c0_4, %c0_5] : memref<128x128xbf16, #tpu.memory_space<vmem>>, vector<128x128xbf16>
    %cst = arith.constant dense<0.000000e+00> : vector<128x128xf32>
    %6 = tpu.matmul %4, %5, %cst {dimension_numbers = #tpu.dot_dimension_numbers<[1], [0], [0], [1], [0, 0, 1, 1], [], []>} : vector<128x128xbf16>, vector<128x128xbf16>, vector<128x128xf32> -> vector<128x128xf32>
    %7 = arith.addf %3, %6 : vector<128x128xf32>
    %c0_6 = arith.constant 0 : index
    %c0_7 = arith.constant 0 : index
    %8 = vector.load %arg6[%c0_6, %c0_7] : memref<128x128xf32, #tpu.memory_space<vmem>>, vector<128x128xf32>
    tpu.vector_store %arg6[%c0_6, %c0_7], %7 {strides = array<i32>} : memref<128x128xf32, #tpu.memory_space<vmem>>, vector<128x128xf32>,
    %c0_i32_8 = arith.constant 0 : i32
    %9 = arith.cmpi eq, %arg1, %c0_i32_8 : i32
    %10 = arith.extui %9 : i1 to i32
    %c0_i32_9 = arith.constant 0 : i32
    %11 = arith.cmpi ne, %10, %c0_i32_9 : i32
    scf.if %11 {
      %c0_10 = arith.constant 0 : index
      %c0_11 = arith.constant 0 : index
      %12 = vector.load %arg6[%c0_10, %c0_11] : memref<128x128xf32, #tpu.memory_space<vmem>>, vector<128x128xf32>
      %13 = arith.truncf %12 : vector<128x128xf32> to vector<128x128xbf16>
      %c0_12 = arith.constant 0 : index
      %c0_13 = arith.constant 0 : index
      %14 = vector.load %arg4[%c0_12, %c0_13] : memref<128x128xbf16, #tpu.memory_space<vmem>>, vector<128x128xbf16>
      %cst_14 = arith.constant dense<0.000000e+00> : vector<128x128xf32>
      %15 = tpu.matmul %13, %14, %cst_14 {dimension_numbers = #tpu.dot_dimension_numbers<[1], [0], [0], [1], [0, 0, 1, 1], [], []>} : vector<128x128xbf16>, vector<128x128xbf16>, vector<128x128xf32> -> vector<128x128xf32>
      %cst_15 = arith.constant 0.000000e+00 : f32
      %16 = vector.broadcast %cst_15 : f32 to vector<128x128xf32>
      %17 = arith.maximumf %15, %16 : vector<128x128xf32>
      %18 = arith.truncf %17 : vector<128x128xf32> to vector<128x128xbf16>
      %c0_16 = arith.constant 0 : index
      %c0_17 = arith.constant 0 : index
      %19 = vector.load %arg5[%c0_16, %c0_17] : memref<128x128xbf16, #tpu.memory_space<vmem>>, vector<128x128xbf16>
      tpu.vector_store %arg5[%c0_16, %c0_17], %18 {strides = array<i32>} : memref<128x128xbf16, #tpu.memory_space<vmem>>, vector<128x128xbf16>,
    } else {
    }
    return
  }
  func.func @transform_0(%arg0: i32, %arg1: i32) -> (i32, i32) {
    %c0_i32 = arith.constant 0 : i32
    return %arg0, %arg1 : i32, i32
  }
  func.func @transform_1(%arg0: i32, %arg1: i32) -> (i32, i32) {
    %c0_i32 = arith.constant 0 : i32
    %c0_i32_0 = arith.constant 0 : i32
    return %arg1, %c0_i32 : i32, i32
  }
  func.func @transform_2(%arg0: i32, %arg1: i32) -> (i32, i32) {
    %c0_i32 = arith.constant 0 : i32
    %c0_i32_0 = arith.constant 0 : i32
    %c0_i32_1 = arith.constant 0 : i32
    return %c0_i32, %c0_i32_0 : i32, i32
  }
  func.func @transform_3(%arg0: i32, %arg1: i32) -> (i32, i32) {
    %c0_i32 = arith.constant 0 : i32
    %c0_i32_0 = arith.constant 0 : i32
    return %arg0, %c0_i32 : i32, i32
  }
}

</mosaic_0001>

<bundles_post_ra>
// kernel: tpu_custom_call.1
= control target key start
LH: loop header
LB: loop body
LE: loop exit
PB: predicated region body
PF: predicated region fallthrough
CT: control target
= control target key end

     0   :  { %8 = vsyncpa [#allocation4], 0  ;;  %s1017_s0 = inlined_call_operand.hbm [shape: bf16[128,128], index: 0, kind: input, shape index: {}]   ;;  %s1018_s1 = inlined_call_operand.hbm [shape: bf16[128,128], index: 1, kind: input, shape index: {}]   ;;  %s1019_s2 = inlined_call_operand.hbm [shape: bf16[128,128], index: 2, kind: input, shape index: {}]   ;;  %s1020_s3 = inlined_call_operand.hbm [shape: bf16[128,128], index: 3, kind: output, shape index: {}]  }
   0x1   :  { %9 = vsyncpa [#allocation7], 0 }
   0x2   :  { %10 = vsyncpa [#allocation5], 0  ;;  %s967_s12 = smov [#allocation6]   ;;  %s968_s14 = smov [#allocation3]  }
   0x3   :  { %s28_s13 = sshll.u32 %s967_s12, 4  ;;  %s16_s15 = sshll.u32 %s968_s14, 4  ;;  %s29_s13 = int_to_ptr.vmem [resolvable:$true] %s28_s13  ;;  %s17_s15 = int_to_ptr.vmem [resolvable:$true] %s16_s15 }
   0x4   :  { %s889_s16 = scalar_lea.vmem %s29_s13, 1024  ;;  %p894_p1 = scmp.lt.s32.totalorder %s29_s13, %s29_s13 }
   0x5   :  { %p890_p0 = scmp.ne.s32.totalorder %s29_s13, %s889_s16  ;;  %p895_p2 = scmp.lt.s32.totalorder %s889_s16, %s889_s16 }
   0x7   :  { %p896_p3 = por %p895_p2, %p894_p1 }
   0x9   :  { %p897_p4 = pnand %p896_p3, %p890_p0 }
   0xb   :  { %900 = shalt.err (!%p897_p4)
}
   0xc   :  { %s969_s17 = smov 64   ;;  %s970_s18 = smov 4  }
   0xd   :  { %34 = dma.hbm_to_vmem [thread:$0]  %s1018_s1, 1024, %s29_s13, [#allocation7], %s969_s17, %s969_s17, %s970_s18  }
   0xe   :  { %s909_s21 = scalar_lea.vmem %s17_s15, 1024  ;;  %p914_p6 = scmp.lt.s32.totalorder %s17_s15, %s17_s15 }
   0xf   :  { %p910_p5 = scmp.ne.s32.totalorder %s17_s15, %s909_s21  ;;  %p915_p7 = scmp.lt.s32.totalorder %s909_s21, %s909_s21 }
  0x11   :  { %p916_p8 = por %p915_p7, %p914_p6 }
  0x13   :  { %p917_p9 = pnand %p916_p8, %p910_p5 }
  0x15   :  { %920 = shalt.err (!%p917_p9)
}
  0x16   :  { %22 = dma.hbm_to_vmem [thread:$0]  %s1017_s0, 1024, %s17_s15, [#allocation4], %s969_s17, %s969_s17, %s970_s18  }
  0x17   :  { %s971_s24 = smov [#allocation8]  }
  0x18   :  { %s40_s25 = sshll.u32 %s971_s24, 4  ;;  %s41_s25 = int_to_ptr.vmem [resolvable:$true] %s40_s25 }
  0x19   :  { %s929_s26 = scalar_lea.vmem %s41_s25, 1024  ;;  %p934_p11 = scmp.lt.s32.totalorder %s41_s25, %s41_s25 }
  0x1a   :  { %p930_p10 = scmp.ne.s32.totalorder %s41_s25, %s929_s26  ;;  %p935_p12 = scmp.lt.s32.totalorder %s929_s26, %s929_s26 }
  0x1c   :  { %p936_p13 = por %p935_p12, %p934_p11 }
  0x1e   :  { %p937_p0 = pnand %p936_p13, %p930_p10 }
  0x20   :  { %940 = shalt.err (!%p937_p0)
}
  0x21   :  { %46 = dma.hbm_to_vmem [thread:$0]  %s1019_s2, 1024, %s41_s25, [#allocation7], %s969_s17, %s969_s17, %s970_s18  }
  0x22   :  { %961 = dma.done.wait [#allocation4], 1024  }
  0x23   :  { %962 = vsyncadd [#allocation4], 4294966272 }
  0x24   :  { %963 = dma.done.wait [#allocation7], 2048  }
  0x25   :  { %964 = vsyncadd [#allocation7], 4294965248  ;;  %v857_v0 = vld [vmem:[#allocation6 + $0x38] sm:$0xff]   ;;  %v858_v1 = vld [vmem:[#allocation6 + $0x30] sm:$0xff]   ;;  %s972_s0 = smov [#allocation9]  }
  0x26   :  { %787 = vmatprep.subr.bf16.mxu0 %v857_v0  ;;  %v859_v2 = vld [vmem:[#allocation6 + $0x28] sm:$0xff]   ;;  %v860_v3 = vld [vmem:[#allocation6 + $0x20] sm:$0xff]   ;;  %v861_v5 = vld [vmem:[#allocation6 + $0x18] sm:$0xff]   ;;  %s639_s2 = sshll.u32 %s972_s0, 4  ;;  %s640_s2 = int_to_ptr.vmem [resolvable:$true] %s639_s2 }
  0x27   :  { %788 = vmatpush3.bf16.msra.mxu0 %v857_v0  ;;  %v865_v4 = vld [vmem:[#allocation3] sm:$0xff]   ;;  %v862_v6 = vld [vmem:[#allocation6 + $0x10] sm:$0xff]   ;;  %v873_v7 = vld [vmem:[#allocation8 + $0x38] sm:$0xff]   ;;  %s941_s28 = scalar_lea.vmem %s640_s2, 1024  ;;  %p946_p2 = scmp.lt.s32.totalorder %s640_s2, %s640_s2 }
  0x28   :  { %789 = vmatprep.subr.bf16.mxu0 %v858_v1  ;;  %803 = vmatprep.mubr.bf16.mxu0 %v865_v4  ;;  %v874_v8 = vld [vmem:[#allocation8 + $0x30] sm:$0xff]   ;;  %v863_v9 = vld [vmem:[#allocation6 + $0x8] sm:$0xff]   ;;  %v864_v11 = vld [vmem:[#allocation6] sm:$0xff]   ;;  %p942_p1 = scmp.ne.s32.totalorder %s640_s2, %s941_s28  ;;  %p947_p3 = scmp.lt.s32.totalorder %s941_s28, %s941_s28 }
  0x29   :  { %819 = vmatprep.subr.bf16.mxu1 %v873_v7  ;;  %v875_v10 = vld [vmem:[#allocation8 + $0x28] sm:$0xff]   ;;  %v876_v12 = vld [vmem:[#allocation8 + $0x20] sm:$0xff]   ;;  %v877_v13 = vld [vmem:[#allocation8 + $0x18] sm:$0xff]  }
  0x2a   :  { %820 = vmatpush3.bf16.msra.mxu1 %v873_v7  ;;  %v866_v14 = vld [vmem:[#allocation3 + $0x8] sm:$0xff]   ;;  %v867_v15 = vld [vmem:[#allocation3 + $0x10] sm:$0xff]   ;;  %v868_v17 = vld [vmem:[#allocation3 + $0x18] sm:$0xff]   ;;  %p948_p4 = por %p947_p3, %p946_p2 }
  0x2b   :  { %790 = vmatpush3.bf16.msra.mxu0 %v858_v1  ;;  %821 = vmatprep.subr.bf16.mxu1 %v874_v8  ;;  %v878_v16 = vld [vmem:[#allocation8 + $0x10] sm:$0xff]   ;;  %v869_v18 = vld [vmem:[#allocation3 + $0x20] sm:$0xff]   ;;  %v870_v19 = vld [vmem:[#allocation3 + $0x28] sm:$0xff]  }
  0x2c   :  { %791 = vmatprep.subr.bf16.mxu0 %v859_v2  ;;  %v871_v20 = vld [vmem:[#allocation3 + $0x30] sm:$0xff]   ;;  %v872_v21 = vld [vmem:[#allocation3 + $0x38] sm:$0xff]   ;;  %v879_v22 = vld [vmem:[#allocation8 + $0x8] sm:$0xff]   ;;  %p949_p5 = pnand %p948_p4, %p942_p1 }
  0x2d   :  { %v880_v23 = vld [vmem:[#allocation8] sm:$0xff]  }
  0x2e   :  { %822 = vmatpush3.bf16.msra.mxu1 %v874_v8 }
  0x2f   :  { %792 = vmatpush3.bf16.msra.mxu0 %v859_v2  ;;  %823 = vmatprep.subr.bf16.mxu1 %v875_v10 }
  0x30   :  { %793 = vmatprep.subr.bf16.mxu0 %v860_v3 }
  0x32   :  { %824 = vmatpush3.bf16.msra.mxu1 %v875_v10 }
  0x33   :  { %794 = vmatpush3.bf16.msra.mxu0 %v860_v3  ;;  %825 = vmatprep.subr.bf16.mxu1 %v876_v12 }
  0x34   :  { %795 = vmatprep.subr.bf16.mxu0 %v861_v5 }
  0x36   :  { %826 = vmatpush3.bf16.msra.mxu1 %v876_v12 }
  0x37   :  { %796 = vmatpush3.bf16.msra.mxu0 %v861_v5  ;;  %827 = vmatprep.subr.bf16.mxu1 %v877_v13 }
  0x38   :  { %797 = vmatprep.subr.bf16.mxu0 %v862_v6 }
  0x3a   :  { %828 = vmatpush3.bf16.msra.mxu1 %v877_v13 }
  0x3b   :  { %798 = vmatpush3.bf16.msra.mxu0 %v862_v6  ;;  %829 = vmatprep.subr.bf16.mxu1 %v878_v16 }
  0x3c   :  { %799 = vmatprep.subr.bf16.mxu0 %v863_v9 }
  0x3e   :  { %830 = vmatpush3.bf16.msra.mxu1 %v878_v16 }
  0x3f   :  { %800 = vmatpush3.bf16.msra.mxu0 %v863_v9  ;;  %831 = vmatprep.subr.bf16.mxu1 %v879_v22 }
  0x40   :  { %801 = vmatprep.subr.bf16.mxu0 %v864_v11 }
  0x42   :  { %832 = vmatpush3.bf16.msra.mxu1 %v879_v22 }
  0x43   :  { %802 = vmatpush3.bf16.msra.mxu0 %v864_v11  ;;  %833 = vmatprep.subr.bf16.mxu1 %v880_v23 }
  0x46   :  { %804 = vmatmul.mubr.bf16.vlgmr.msra.gmra.mxu0 %v866_v14  ;;  %834 = vmatpush3.bf16.msra.mxu1 %v880_v23 }
  0x47   :  { %807 = vmatprep.mubr.bf16.mxu0 %v867_v15 }
  0x4e   :  { %808 = vmatmul.mubr.bf16.gmra.mxu0 %v868_v17 }
  0x4f   :  { %811 = vmatprep.mubr.bf16.mxu0 %v869_v18 }
  0x56   :  { %812 = vmatmul.mubr.bf16.gmra.mxu0 %v870_v19 }
  0x57   :  { %815 = vmatprep.mubr.bf16.mxu0 %v871_v20 }
  0x5e   :  { %816 = vmatmul.mubr.bf16.gmra.mxu0 %v872_v21 }
 0x106   :  { %v805_v24 = vpop.f32.mrf.mxu0 }
 0x108   :  { %v255_v25 = vpop.f32.mrf.mxu0 }
 0x10a   :  { %v806_v26 = vpop.f32.mrf.mxu0 }
 0x10b   :  { %v370_v29 = vpack.c.bf16 %v806_v26, %v805_v24 }
 0x10c   :  { %v258_v27 = vpop.f32.mrf.mxu0 }
 0x10d   :  { %v369_v28 = vpack.c.bf16 %v258_v27, %v255_v25 }
 0x10e   :  { %v809_v30 = vpop.f32.mrf.mxu0 }
 0x10f   :  { %835 = vmatprep.mubr.bf16.mxu1 %v369_v28 }
 0x110   :  { %v271_v31 = vpop.f32.mrf.mxu0  ;;  %836 = vmatmul.mubr.bf16.vlgmr.msra.gmra.mxu1 %v370_v29 }
 0x112   :  { %v810_v32 = vpop.f32.mrf.mxu0 }
 0x113   :  { %v372_v35 = vpack.c.bf16 %v810_v32, %v809_v30 }
 0x114   :  { %v274_v33 = vpop.f32.mrf.mxu0 }
 0x115   :  { %v371_v34 = vpack.c.bf16 %v274_v33, %v271_v31 }
 0x116   :  { %v813_v36 = vpop.f32.mrf.mxu0 }
 0x117   :  { %839 = vmatprep.mubr.bf16.mxu1 %v371_v34 }
 0x118   :  { %v287_v37 = vpop.f32.mrf.mxu0  ;;  %840 = vmatmul.mubr.bf16.gmra.mxu1 %v372_v35 }
 0x11a   :  { %v814_v38 = vpop.f32.mrf.mxu0 }
 0x11b   :  { %v374_v41 = vpack.c.bf16 %v814_v38, %v813_v36 }
 0x11c   :  { %v290_v39 = vpop.f32.mrf.mxu0 }
 0x11d   :  { %v373_v40 = vpack.c.bf16 %v290_v39, %v287_v37 }
 0x11e   :  { %v817_v42 = vpop.f32.mrf.mxu0 }
 0x11f   :  { %843 = vmatprep.mubr.bf16.mxu1 %v373_v40 }
 0x120   :  { %v303_v43 = vpop.f32.mrf.mxu0  ;;  %844 = vmatmul.mubr.bf16.gmra.mxu1 %v374_v41 }
 0x122   :  { %v818_v44 = vpop.f32.mrf.mxu0 }
 0x123   :  { %v376_v47 = vpack.c.bf16 %v818_v44, %v817_v42 }
 0x124   :  { %v306_v45 = vpop.f32.mrf.mxu0 }
 0x125   :  { %v375_v46 = vpack.c.bf16 %v306_v45, %v303_v43 }
 0x127   :  { %847 = vmatprep.mubr.bf16.mxu1 %v375_v46 }
 0x128   :  { %848 = vmatmul.mubr.bf16.gmra.mxu1 %v376_v47 }
 0x1d0   :  { %v837_v48 = vpop.f32.mrf.mxu1 }
 0x1d1   :  { %v540_v51 = vmax.f32 %v837_v48, 0.0 }
 0x1d2   :  { %v475_v49 = vpop.f32.mrf.mxu1 }
 0x1d3   :  { %v538_v54 = vmax.f32 %v475_v49, 0.0 }
 0x1d4   :  { %v838_v50 = vpop.f32.mrf.mxu1 }
 0x1d5   :  { %v541_v52 = vmax.f32 %v838_v50, 0.0 }
 0x1d6   :  { %v478_v53 = vpop.f32.mrf.mxu1 }
 0x1d7   :  { %v716_v55 = vpack.c.bf16 %v541_v52, %v540_v51  ;;  %v539_v56 = vmax.f32 %v478_v53, 0.0 }
 0x1d8   :  { %v841_v57 = vpop.f32.mrf.mxu1 }
 0x1d9   :  { %748 = vst [vmem:[#allocation9 + $0x8] sm:$0xff] %v716_v55   ;;  %v711_v58 = vpack.c.bf16 %v539_v56, %v538_v54  ;;  %v544_v61 = vmax.f32 %v841_v57, 0.0 }
 0x1da   :  { %v491_v59 = vpop.f32.mrf.mxu1 }
 0x1db   :  { %712 = vst [vmem:[#allocation9] sm:$0xff] %v711_v58   ;;  %v542_v0 = vmax.f32 %v491_v59, 0.0 }
 0x1dc   :  { %v842_v60 = vpop.f32.mrf.mxu1 }
 0x1dd   :  { %v545_v62 = vmax.f32 %v842_v60, 0.0 }
 0x1de   :  { %v494_v63 = vpop.f32.mrf.mxu1 }
 0x1df   :  { %v726_v1 = vpack.c.bf16 %v545_v62, %v544_v61  ;;  %v543_v2 = vmax.f32 %v494_v63, 0.0 }
 0x1e0   :  { %v845_v3 = vpop.f32.mrf.mxu1 }
 0x1e1   :  { %750 = vst [vmem:[#allocation9 + $0x18] sm:$0xff] %v726_v1   ;;  %v721_v4 = vpack.c.bf16 %v543_v2, %v542_v0  ;;  %v548_v7 = vmax.f32 %v845_v3, 0.0 }
 0x1e2   :  { %v507_v5 = vpop.f32.mrf.mxu1 }
 0x1e3   :  { %749 = vst [vmem:[#allocation9 + $0x10] sm:$0xff] %v721_v4   ;;  %v546_v10 = vmax.f32 %v507_v5, 0.0 }
 0x1e4   :  { %v846_v6 = vpop.f32.mrf.mxu1 }
 0x1e5   :  { %v549_v8 = vmax.f32 %v846_v6, 0.0 }
 0x1e6   :  { %v510_v9 = vpop.f32.mrf.mxu1 }
 0x1e7   :  { %v736_v11 = vpack.c.bf16 %v549_v8, %v548_v7  ;;  %v547_v12 = vmax.f32 %v510_v9, 0.0 }
 0x1e8   :  { %v849_v13 = vpop.f32.mrf.mxu1 }
 0x1e9   :  { %752 = vst [vmem:[#allocation9 + $0x28] sm:$0xff] %v736_v11   ;;  %v731_v14 = vpack.c.bf16 %v547_v12, %v546_v10  ;;  %v552_v17 = vmax.f32 %v849_v13, 0.0 }
 0x1ea   :  { %v523_v15 = vpop.f32.mrf.mxu1 }
 0x1eb   :  { %751 = vst [vmem:[#allocation9 + $0x20] sm:$0xff] %v731_v14   ;;  %v550_v20 = vmax.f32 %v523_v15, 0.0 }
 0x1ec   :  { %v850_v16 = vpop.f32.mrf.mxu1 }
 0x1ed   :  { %v553_v18 = vmax.f32 %v850_v16, 0.0 }
 0x1ee   :  { %v526_v19 = vpop.f32.mrf.mxu1 }
 0x1ef   :  { %v746_v21 = vpack.c.bf16 %v553_v18, %v552_v17  ;;  %v551_v22 = vmax.f32 %v526_v19, 0.0 }
 0x1f1   :  { %754 = vst [vmem:[#allocation9 + $0x38] sm:$0xff] %v746_v21   ;;  %v741_v23 = vpack.c.bf16 %v551_v22, %v550_v20 }
 0x1f3   :  { %753 = vst [vmem:[#allocation9 + $0x30] sm:$0xff] %v741_v23  }
 0x1f4   :  { %952 = shalt.err (!%p949_p5)
}
 0x1f5   :  { %645 = dma.vmem_to_hbm [thread:$0]  %s640_s2, 1024, %s1020_s3, [#allocation5], %s969_s17, %s969_s17, %s970_s18  }
 0x1f6   :  { %965 = dma.done.wait [#allocation5], 1024  }
 0x1f7   :  { %966 = vsyncadd [#allocation5], 4294966272 }
 0x1f8   :  { %649 = vsyncpa [#allocation4], 1 }
 0x1f9   :  { %650 = vsyncpa [#allocation7], 1 }
 0x1fa   :  { %651 = vsyncpa [#allocation5], 1 }

</bundles_post_ra>
